<compile_context>
chip_gen: v6e
topology: v6e:2x2x1
jax: 0.10.0
libtpu: 0.0.40
codegen_flags: <defaults>
</compile_context>

<pallas_src>
import jax
import jax.numpy as jnp
from jax.experimental import pallas as pl
from jax.experimental.pallas import tpu as pltpu

HIDDEN = 64  # fixed by the module (Linear(input_dim, 64), LSTM(64, 64))


def critic_kernel(x_ref, w1_ref, b1_ref, wih_ref, whh_ref, blstm_ref,
                  w2_ref, b2_ref, q_ref, hs_ref):
    # x_ref   : (T*B, Do+Da) bf16  time-major flattened inputs, batch padded to a sublane multiple
    # w1_ref  : (Do+Da, H)   bf16  dense1 W^T (x @ W layout)
    # b1_ref  : (1, H)       f32
    # wih_ref : (H, 4H)      bf16  LSTM W_ih^T, gate order [i, f, o, g]
    # whh_ref : (H, 4H)      bf16  LSTM W_hh^T, gate order [i, f, o, g]
    # blstm   : (1, 4H)      f32   b_ih + b_hh
    # w2_ref  : (out_dim, H) f32   dense2 weight, torch (out, in) layout
    # b2_ref  : (1, out_dim) f32
    # q_ref   : (B, out_dim) f32   output
    # hs_ref  : (T, B, H)    f32   VMEM scratch holding all LSTM hidden states
    H = HIDDEN
    T, B, _ = hs_ref.shape

    # Hoist all weight / bias loads out of the recurrence (loaded once, vreg-resident).
    w1 = w1_ref[...]
    b1 = b1_ref[...]
    wih = wih_ref[...]
    whh = whh_ref[...]
    blstm = blstm_ref[...]

    # TimeDistributed dense1 + ReLU over the whole flattened (T*B) sequence: one MXU pass.
    # (This is exactly the TimeDistributed contract: view(t*n, d) -> Linear -> view back.)
    h1 = jnp.maximum(
        jnp.dot(x_ref[...], w1, preferred_element_type=jnp.float32) + b1, 0.0)   # (T*B, H) f32

    # Input contribution to all LSTM gates for every timestep: one big matmul, kept in vregs.
    xg = jnp.dot(h1.astype(jnp.bfloat16), wih,
                 preferred_element_type=jnp.float32) + blstm                     # (T*B, 4H) f32

    # Fully-unrolled LSTM recurrence (static, small T).  B is a sublane multiple, so each timestep
    # slice of xg is a tile-aligned static slice.  Gate order [i, f, o, g]: one sigmoid on the
    # contiguous first 3H columns, tanh only on the last H.
    h = jnp.zeros((B, H), jnp.float32)
    c = jnp.zeros((B, H), jnp.float32)
    for t in range(T):
        gates = xg[t * B:(t + 1) * B, :] + jnp.dot(
            h.astype(jnp.bfloat16), whh, preferred_element_type=jnp.float32)     # (B, 4H) f32
        s = jax.nn.sigmoid(gates[:, :3 * H])
        g = jnp.tanh(gates[:, 3 * H:])
        c = s[:, H:2 * H] * c + s[:, :H] * g
        h = s[:, 2 * H:3 * H] * jnp.tanh(c)
        hs_ref[t] = h
    h_last = h

    # attention_net: score each timestep against the final hidden state, softmax over time,
    # weighted sum of the LSTM outputs.  Fused whole-tensor ops on the stacked (T, B, H) states.
    hs = hs_ref[...]                                                    # (T, B, H)
    scores = jnp.sum(hs * h_last[None, :, :], axis=-1, keepdims=True)   # (T, B, 1)
    m = jnp.max(scores, axis=0, keepdims=True)                          # (1, B, 1)
    e = jnp.exp(scores - m)                                             # (T, B, 1)
    denom = jnp.sum(e, axis=0)                                          # (B, 1)
    acc = jnp.sum(e * hs, axis=0)                                       # (B, H)
    new_hidden = acc * pl.reciprocal(denom, approx=True)                # (B, H)

    # dense2.  out_dim == 1: multiply + lane reduction (avoids an N=1 MXU matmul + FIFO-pop latency
    # at the very tail).  Generic out_dim falls back to a dot contracting on H (no transpose needed).
    w2 = w2_ref[...]                                                    # (out_dim, H) f32
    b2 = b2_ref[...]                                                    # (1, out_dim) f32
    if w2.shape[0] == 1:
        q_ref[...] = jnp.sum(new_hidden * w2, axis=-1, keepdims=True) + b2
    else:
        q_ref[...] = jax.lax.dot_general(
            new_hidden, w2, (((1,), (1,)), ((), ())),
            preferred_element_type=jnp.float32) + b2


def critic_forward(obs, action, params, out_dim=1):
    # obs: (B, T, Do), action: (B, T, Da) -- PyTorch batch-first convention.
    B, T, Do = obs.shape
    Da = action.shape[-1]
    H = HIDDEN
    B_pad = max(8, -(-B // 8) * 8)   # pad batch to the f32 sublane count

    # concat + zero-pad + batch-first -> time-major flatten stay in XLA (they fuse into one copy),
    # so the kernel sees clean tile-aligned (T*B_pad, D) rows and does no in-kernel relayout.
    x = jnp.concatenate([obs.astype(jnp.float32), action.astype(jnp.float32)], axis=-1)  # (B,T,D)
    if B_pad != B:
        x = jnp.pad(x, ((0, B_pad - B), (0, 0), (0, 0)))
    x_tm = jnp.transpose(x, (1, 0, 2)).reshape(T * B_pad, Do + Da).astype(jnp.bfloat16)

    vmem = pl.BlockSpec(memory_space=pltpu.MemorySpace.VMEM)
    q = pl.pallas_call(
        critic_kernel,
        out_shape=jax.ShapeDtypeStruct((B_pad, out_dim), jnp.float32),
        in_specs=[vmem] * 8,
        out_specs=vmem,
        scratch_shapes=[pltpu.VMEM((T, B_pad, H), jnp.float32)],
    )(
        x_tm,
        params["w1"], params["b1"],
        params["wih"], params["whh"], params["b_lstm"],
        params["w2"], params["b2"],
    )
    # Padded rows are garbage but never mix with real rows (all ops are row-wise); slice them off.
    return q[:B]   # list semantics of the torch module: [Q] (model_own=model_adv=False)


def init_params(key, obs_dim, act_dim, out_dim=1):
    ks = jax.random.split(key, 7)
    H = HIDDEN
    D = obs_dim + act_dim
    u = lambda k, shape, s=0.1: jax.random.uniform(k, shape, jnp.float32, -s, s)
    return {
        # MXU-operand weights stored in bf16; biases and the dense2 (VPU) weight stay f32.
        "w1": u(ks[0], (D, H)).astype(jnp.bfloat16),       # dense1 W^T (x @ W layout)
        "b1": u(ks[1], (1, H)),
        "wih": u(ks[2], (H, 4 * H)).astype(jnp.bfloat16),  # W_ih^T, gate order [i, f, o, g]
        "whh": u(ks[3], (H, 4 * H)).astype(jnp.bfloat16),  # W_hh^T, gate order [i, f, o, g]
        "b_lstm": u(ks[4], (1, 4 * H)),                    # b_ih + b_hh, gate order [i, f, o, g]
        "w2": u(ks[5], (out_dim, H)),                      # dense2 weight, torch (out, in) layout
        "b2": u(ks[6], (1, out_dim)),
    }


def ref_forward(obs, action, params):
    # Pure-JAX f32 reference mirroring the PyTorch forward, using the same weight values.
    obs = obs.astype(jnp.float32)
    action = action.astype(jnp.float32)
    B, T, _ = obs.shape
    H = HIDDEN
    w1 = params["w1"].astype(jnp.float32)
    wih = params["wih"].astype(jnp.float32)
    whh = params["whh"].astype(jnp.float32)

    x = jnp.concatenate([obs, action], axis=-1)
    h1 = jax.nn.relu(x @ w1 + params["b1"][0])             # (B, T, H)

    def step(carry, xt):
        h, c = carry
        gates = xt @ wih + params["b_lstm"][0] + h @ whh
        i = jax.nn.sigmoid(gates[:, :H])
        f = jax.nn.sigmoid(gates[:, H:2 * H])
        o = jax.nn.sigmoid(gates[:, 2 * H:3 * H])
        g = jnp.tanh(gates[:, 3 * H:])
        c = f * c + i * g
        h = o * jnp.tanh(c)
        return (h, c), h

    (hT, _), hs = jax.lax.scan(
        step,
        (jnp.zeros((B, H), jnp.float32), jnp.zeros((B, H), jnp.float32)),
        jnp.transpose(h1, (1, 0, 2)),
    )
    hs = jnp.transpose(hs, (1, 0, 2))                      # (B, T, H)
    attn = jnp.sum(hs * hT[:, None, :], axis=-1)           # (B, T)
    soft = jax.nn.softmax(attn, axis=1)
    new_h = jnp.sum(hs * soft[:, :, None], axis=1)         # (B, H)
    return new_h @ params["w2"].astype(jnp.float32).T + params["b2"][0]


if __name__ == "__main__":
    B, T = 2, 8
    obs_dim, act_dim = 12, 4
    out_dim = 1

    key = jax.random.PRNGKey(0)
    k_obs, k_act, k_par = jax.random.split(key, 3)
    obs = jax.random.normal(k_obs, (B, T, obs_dim), jnp.float32)
    action = jax.random.normal(k_act, (B, T, act_dim), jnp.float32)
    params = init_params(k_par, obs_dim, act_dim, out_dim)

    q = critic_forward(obs, action, params, out_dim=out_dim)
    q = jax.block_until_ready(q)

    q_ref = ref_forward(obs, action, params)
    assert q.shape == (B, out_dim)
    # bf16 matmul operands + approx reciprocal in the kernel -> slightly looser tolerance vs f32 ref.
    assert jnp.allclose(q, q_ref, rtol=2e-2, atol=2e-2), (q, q_ref)

    print("KERNEL_OK")
</pallas_src>

<mosaic_0001>
module attributes {stable_mosaic.version = 11 : i64} {
  func.func @critic_kernel(%arg0: memref<64x16xbf16, #tpu.memory_space<vmem>>, %arg1: memref<16x64xbf16, #tpu.memory_space<vmem>>, %arg2: memref<1x64xf32, #tpu.memory_space<vmem>>, %arg3: memref<64x256xbf16, #tpu.memory_space<vmem>>, %arg4: memref<64x256xbf16, #tpu.memory_space<vmem>>, %arg5: memref<1x256xf32, #tpu.memory_space<vmem>>, %arg6: memref<1x64xf32, #tpu.memory_space<vmem>>, %arg7: memref<1x1xf32, #tpu.memory_space<vmem>>, %arg8: memref<8x1xf32, #tpu.memory_space<vmem>>, %arg9: memref<8x8x64xf32, #tpu.memory_space<vmem>>) attributes {dimension_semantics = [], scalar_prefetch = 0 : i64, scratch_operands = 1 : i64, tpu.core_type = #tpu.core_type<tc>} {
    %c0 = arith.constant 0 : index
    %c0_0 = arith.constant 0 : index
    %0 = vector.load %arg1[%c0, %c0_0] : memref<16x64xbf16, #tpu.memory_space<vmem>>, vector<16x64xbf16>
    %c0_1 = arith.constant 0 : index
    %c0_2 = arith.constant 0 : index
    %1 = vector.load %arg2[%c0_1, %c0_2] : memref<1x64xf32, #tpu.memory_space<vmem>>, vector<1x64xf32>
    %c0_3 = arith.constant 0 : index
    %c0_4 = arith.constant 0 : index
    %2 = vector.load %arg3[%c0_3, %c0_4] : memref<64x256xbf16, #tpu.memory_space<vmem>>, vector<64x256xbf16>
    %c0_5 = arith.constant 0 : index
    %c0_6 = arith.constant 0 : index
    %3 = vector.load %arg4[%c0_5, %c0_6] : memref<64x256xbf16, #tpu.memory_space<vmem>>, vector<64x256xbf16>
    %c0_7 = arith.constant 0 : index
    %c0_8 = arith.constant 0 : index
    %4 = vector.load %arg5[%c0_7, %c0_8] : memref<1x256xf32, #tpu.memory_space<vmem>>, vector<1x256xf32>
    %c0_9 = arith.constant 0 : index
    %c0_10 = arith.constant 0 : index
    %5 = vector.load %arg0[%c0_9, %c0_10] : memref<64x16xbf16, #tpu.memory_space<vmem>>, vector<64x16xbf16>
    %cst = arith.constant dense<0.000000e+00> : vector<64x64xf32>
    %6 = tpu.matmul %5, %0, %cst {dimension_numbers = #tpu.dot_dimension_numbers<[1], [0], [0], [1], [0, 0, 1, 1], [], []>} : vector<64x16xbf16>, vector<16x64xbf16>, vector<64x64xf32> -> vector<64x64xf32>
    %7 = vector.broadcast %1 : vector<1x64xf32> to vector<64x64xf32>
    %8 = arith.addf %6, %7 : vector<64x64xf32>
    %cst_11 = arith.constant 0.000000e+00 : f32
    %9 = vector.broadcast %cst_11 : f32 to vector<64x64xf32>
    %10 = arith.maximumf %8, %9 : vector<64x64xf32>
    %11 = arith.truncf %10 : vector<64x64xf32> to vector<64x64xbf16>
    %cst_12 = arith.constant dense<0.000000e+00> : vector<64x256xf32>
    %12 = tpu.matmul %11, %2, %cst_12 {dimension_numbers = #tpu.dot_dimension_numbers<[1], [0], [0], [1], [0, 0, 1, 1], [], []>} : vector<64x64xbf16>, vector<64x256xbf16>, vector<64x256xf32> -> vector<64x256xf32>
    %13 = vector.broadcast %4 : vector<1x256xf32> to vector<64x256xf32>
    %14 = arith.addf %12, %13 : vector<64x256xf32>
    %cst_13 = arith.constant 0.000000e+00 : f32
    %15 = vector.broadcast %cst_13 : f32 to vector<8x64xf32>
    %cst_14 = arith.constant 0.000000e+00 : f32
    %16 = vector.broadcast %cst_14 : f32 to vector<8x64xf32>
    %17 = vector.extract_strided_slice %14 {offsets = [0, 0], sizes = [8, 256], strides = [1, 1]} : vector<64x256xf32> to vector<8x256xf32>
    %18 = arith.truncf %15 : vector<8x64xf32> to vector<8x64xbf16>
    %cst_15 = arith.constant dense<0.000000e+00> : vector<8x256xf32>
    %19 = tpu.matmul %18, %3, %cst_15 {dimension_numbers = #tpu.dot_dimension_numbers<[1], [0], [0], [1], [0, 0, 1, 1], [], []>} : vector<8x64xbf16>, vector<64x256xbf16>, vector<8x256xf32> -> vector<8x256xf32>
    %20 = arith.addf %17, %19 : vector<8x256xf32>
    %21 = vector.extract_strided_slice %20 {offsets = [0, 0], sizes = [8, 192], strides = [1, 1]} : vector<8x256xf32> to vector<8x192xf32>
    %22 = arith.negf %21 : vector<8x192xf32>
    %23 = math.exp %22 : vector<8x192xf32>
    %cst_16 = arith.constant 1.000000e+00 : f32
    %24 = vector.broadcast %cst_16 : f32 to vector<8x192xf32>
    %25 = arith.addf %24, %23 : vector<8x192xf32>
    %26 = arith.divf %24, %25 : vector<8x192xf32>
    %27 = vector.extract_strided_slice %20 {offsets = [0, 192], sizes = [8, 64], strides = [1, 1]} : vector<8x256xf32> to vector<8x64xf32>
    %28 = math.tanh %27 : vector<8x64xf32>
    %29 = vector.extract_strided_slice %26 {offsets = [0, 64], sizes = [8, 64], strides = [1, 1]} : vector<8x192xf32> to vector<8x64xf32>
    %30 = arith.mulf %29, %16 : vector<8x64xf32>
    %31 = vector.extract_strided_slice %26 {offsets = [0, 0], sizes = [8, 64], strides = [1, 1]} : vector<8x192xf32> to vector<8x64xf32>
    %32 = arith.mulf %31, %28 : vector<8x64xf32>
    %33 = arith.addf %30, %32 : vector<8x64xf32>
    %34 = vector.extract_strided_slice %26 {offsets = [0, 128], sizes = [8, 64], strides = [1, 1]} : vector<8x192xf32> to vector<8x64xf32>
    %35 = math.tanh %33 : vector<8x64xf32>
    %36 = arith.mulf %34, %35 : vector<8x64xf32>
    %c0_17 = arith.constant 0 : index
    %c0_18 = arith.constant 0 : index
    %c0_19 = arith.constant 0 : index
    %37 = vector.load %arg9[%c0_17, %c0_18, %c0_19] : memref<8x8x64xf32, #tpu.memory_space<vmem>>, vector<1x8x64xf32>
    %38 = vector.shape_cast %37 : vector<1x8x64xf32> to vector<8x64xf32>
    %39 = vector.shape_cast %36 : vector<8x64xf32> to vector<1x8x64xf32>
    tpu.vector_store %arg9[%c0_17, %c0_18, %c0_19], %39 {strides = array<i32>} : memref<8x8x64xf32, #tpu.memory_space<vmem>>, vector<1x8x64xf32>,
    %40 = vector.extract_strided_slice %14 {offsets = [8, 0], sizes = [8, 256], strides = [1, 1]} : vector<64x256xf32> to vector<8x256xf32>
    %41 = arith.truncf %36 : vector<8x64xf32> to vector<8x64xbf16>
    %cst_20 = arith.constant dense<0.000000e+00> : vector<8x256xf32>
    %42 = tpu.matmul %41, %3, %cst_20 {dimension_numbers = #tpu.dot_dimension_numbers<[1], [0], [0], [1], [0, 0, 1, 1], [], []>} : vector<8x64xbf16>, vector<64x256xbf16>, vector<8x256xf32> -> vector<8x256xf32>
    %43 = arith.addf %40, %42 : vector<8x256xf32>
    %44 = vector.extract_strided_slice %43 {offsets = [0, 0], sizes = [8, 192], strides = [1, 1]} : vector<8x256xf32> to vector<8x192xf32>
    %45 = arith.negf %44 : vector<8x192xf32>
    %46 = math.exp %45 : vector<8x192xf32>
    %cst_21 = arith.constant 1.000000e+00 : f32
    %47 = vector.broadcast %cst_21 : f32 to vector<8x192xf32>
    %48 = arith.addf %47, %46 : vector<8x192xf32>
    %49 = arith.divf %47, %48 : vector<8x192xf32>
    %50 = vector.extract_strided_slice %43 {offsets = [0, 192], sizes = [8, 64], strides = [1, 1]} : vector<8x256xf32> to vector<8x64xf32>
    %51 = math.tanh %50 : vector<8x64xf32>
    %52 = vector.extract_strided_slice %49 {offsets = [0, 64], sizes = [8, 64], strides = [1, 1]} : vector<8x192xf32> to vector<8x64xf32>
    %53 = arith.mulf %52, %33 : vector<8x64xf32>
    %54 = vector.extract_strided_slice %49 {offsets = [0, 0], sizes = [8, 64], strides = [1, 1]} : vector<8x192xf32> to vector<8x64xf32>
    %55 = arith.mulf %54, %51 : vector<8x64xf32>
    %56 = arith.addf %53, %55 : vector<8x64xf32>
    %57 = vector.extract_strided_slice %49 {offsets = [0, 128], sizes = [8, 64], strides = [1, 1]} : vector<8x192xf32> to vector<8x64xf32>
    %58 = math.tanh %56 : vector<8x64xf32>
    %59 = arith.mulf %57, %58 : vector<8x64xf32>
    %c1 = arith.constant 1 : index
    %c0_22 = arith.constant 0 : index
    %c0_23 = arith.constant 0 : index
    %60 = vector.load %arg9[%c1, %c0_22, %c0_23] : memref<8x8x64xf32, #tpu.memory_space<vmem>>, vector<1x8x64xf32>
    %61 = vector.shape_cast %60 : vector<1x8x64xf32> to vector<8x64xf32>
    %62 = vector.shape_cast %59 : vector<8x64xf32> to vector<1x8x64xf32>
    tpu.vector_store %arg9[%c1, %c0_22, %c0_23], %62 {strides = array<i32>} : memref<8x8x64xf32, #tpu.memory_space<vmem>>, vector<1x8x64xf32>,
    %63 = vector.extract_strided_slice %14 {offsets = [16, 0], sizes = [8, 256], strides = [1, 1]} : vector<64x256xf32> to vector<8x256xf32>
    %64 = arith.truncf %59 : vector<8x64xf32> to vector<8x64xbf16>
    %cst_24 = arith.constant dense<0.000000e+00> : vector<8x256xf32>
    %65 = tpu.matmul %64, %3, %cst_24 {dimension_numbers = #tpu.dot_dimension_numbers<[1], [0], [0], [1], [0, 0, 1, 1], [], []>} : vector<8x64xbf16>, vector<64x256xbf16>, vector<8x256xf32> -> vector<8x256xf32>
    %66 = arith.addf %63, %65 : vector<8x256xf32>
    %67 = vector.extract_strided_slice %66 {offsets = [0, 0], sizes = [8, 192], strides = [1, 1]} : vector<8x256xf32> to vector<8x192xf32>
    %68 = arith.negf %67 : vector<8x192xf32>
    %69 = math.exp %68 : vector<8x192xf32>
    %cst_25 = arith.constant 1.000000e+00 : f32
    %70 = vector.broadcast %cst_25 : f32 to vector<8x192xf32>
    %71 = arith.addf %70, %69 : vector<8x192xf32>
    %72 = arith.divf %70, %71 : vector<8x192xf32>
    %73 = vector.extract_strided_slice %66 {offsets = [0, 192], sizes = [8, 64], strides = [1, 1]} : vector<8x256xf32> to vector<8x64xf32>
    %74 = math.tanh %73 : vector<8x64xf32>
    %75 = vector.extract_strided_slice %72 {offsets = [0, 64], sizes = [8, 64], strides = [1, 1]} : vector<8x192xf32> to vector<8x64xf32>
    %76 = arith.mulf %75, %56 : vector<8x64xf32>
    %77 = vector.extract_strided_slice %72 {offsets = [0, 0], sizes = [8, 64], strides = [1, 1]} : vector<8x192xf32> to vector<8x64xf32>
    %78 = arith.mulf %77, %74 : vector<8x64xf32>
    %79 = arith.addf %76, %78 : vector<8x64xf32>
    %80 = vector.extract_strided_slice %72 {offsets = [0, 128], sizes = [8, 64], strides = [1, 1]} : vector<8x192xf32> to vector<8x64xf32>
    %81 = math.tanh %79 : vector<8x64xf32>
    %82 = arith.mulf %80, %81 : vector<8x64xf32>
    %c2 = arith.constant 2 : index
    %c0_26 = arith.constant 0 : index
    %c0_27 = arith.constant 0 : index
    %83 = vector.load %arg9[%c2, %c0_26, %c0_27] : memref<8x8x64xf32, #tpu.memory_space<vmem>>, vector<1x8x64xf32>
    %84 = vector.shape_cast %83 : vector<1x8x64xf32> to vector<8x64xf32>
    %85 = vector.shape_cast %82 : vector<8x64xf32> to vector<1x8x64xf32>
    tpu.vector_store %arg9[%c2, %c0_26, %c0_27], %85 {strides = array<i32>} : memref<8x8x64xf32, #tpu.memory_space<vmem>>, vector<1x8x64xf32>,
    %86 = vector.extract_strided_slice %14 {offsets = [24, 0], sizes = [8, 256], strides = [1, 1]} : vector<64x256xf32> to vector<8x256xf32>
    %87 = arith.truncf %82 : vector<8x64xf32> to vector<8x64xbf16>
    %cst_28 = arith.constant dense<0.000000e+00> : vector<8x256xf32>
    %88 = tpu.matmul %87, %3, %cst_28 {dimension_numbers = #tpu.dot_dimension_numbers<[1], [0], [0], [1], [0, 0, 1, 1], [], []>} : vector<8x64xbf16>, vector<64x256xbf16>, vector<8x256xf32> -> vector<8x256xf32>
    %89 = arith.addf %86, %88 : vector<8x256xf32>
    %90 = vector.extract_strided_slice %89 {offsets = [0, 0], sizes = [8, 192], strides = [1, 1]} : vector<8x256xf32> to vector<8x192xf32>
    %91 = arith.negf %90 : vector<8x192xf32>
    %92 = math.exp %91 : vector<8x192xf32>
    %cst_29 = arith.constant 1.000000e+00 : f32
    %93 = vector.broadcast %cst_29 : f32 to vector<8x192xf32>
    %94 = arith.addf %93, %92 : vector<8x192xf32>
    %95 = arith.divf %93, %94 : vector<8x192xf32>
    %96 = vector.extract_strided_slice %89 {offsets = [0, 192], sizes = [8, 64], strides = [1, 1]} : vector<8x256xf32> to vector<8x64xf32>
    %97 = math.tanh %96 : vector<8x64xf32>
    %98 = vector.extract_strided_slice %95 {offsets = [0, 64], sizes = [8, 64], strides = [1, 1]} : vector<8x192xf32> to vector<8x64xf32>
    %99 = arith.mulf %98, %79 : vector<8x64xf32>
    %100 = vector.extract_strided_slice %95 {offsets = [0, 0], sizes = [8, 64], strides = [1, 1]} : vector<8x192xf32> to vector<8x64xf32>
    %101 = arith.mulf %100, %97 : vector<8x64xf32>
    %102 = arith.addf %99, %101 : vector<8x64xf32>
    %103 = vector.extract_strided_slice %95 {offsets = [0, 128], sizes = [8, 64], strides = [1, 1]} : vector<8x192xf32> to vector<8x64xf32>
    %104 = math.tanh %102 : vector<8x64xf32>
    %105 = arith.mulf %103, %104 : vector<8x64xf32>
    %c3 = arith.constant 3 : index
    %c0_30 = arith.constant 0 : index
    %c0_31 = arith.constant 0 : index
    %106 = vector.load %arg9[%c3, %c0_30, %c0_31] : memref<8x8x64xf32, #tpu.memory_space<vmem>>, vector<1x8x64xf32>
    %107 = vector.shape_cast %106 : vector<1x8x64xf32> to vector<8x64xf32>
    %108 = vector.shape_cast %105 : vector<8x64xf32> to vector<1x8x64xf32>
    tpu.vector_store %arg9[%c3, %c0_30, %c0_31], %108 {strides = array<i32>} : memref<8x8x64xf32, #tpu.memory_space<vmem>>, vector<1x8x64xf32>,
    %109 = vector.extract_strided_slice %14 {offsets = [32, 0], sizes = [8, 256], strides = [1, 1]} : vector<64x256xf32> to vector<8x256xf32>
    %110 = arith.truncf %105 : vector<8x64xf32> to vector<8x64xbf16>
    %cst_32 = arith.constant dense<0.000000e+00> : vector<8x256xf32>
    %111 = tpu.matmul %110, %3, %cst_32 {dimension_numbers = #tpu.dot_dimension_numbers<[1], [0], [0], [1], [0, 0, 1, 1], [], []>} : vector<8x64xbf16>, vector<64x256xbf16>, vector<8x256xf32> -> vector<8x256xf32>
    %112 = arith.addf %109, %111 : vector<8x256xf32>
    %113 = vector.extract_strided_slice %112 {offsets = [0, 0], sizes = [8, 192], strides = [1, 1]} : vector<8x256xf32> to vector<8x192xf32>
    %114 = arith.negf %113 : vector<8x192xf32>
    %115 = math.exp %114 : vector<8x192xf32>
    %cst_33 = arith.constant 1.000000e+00 : f32
    %116 = vector.broadcast %cst_33 : f32 to vector<8x192xf32>
    %117 = arith.addf %116, %115 : vector<8x192xf32>
    %118 = arith.divf %116, %117 : vector<8x192xf32>
    %119 = vector.extract_strided_slice %112 {offsets = [0, 192], sizes = [8, 64], strides = [1, 1]} : vector<8x256xf32> to vector<8x64xf32>
    %120 = math.tanh %119 : vector<8x64xf32>
    %121 = vector.extract_strided_slice %118 {offsets = [0, 64], sizes = [8, 64], strides = [1, 1]} : vector<8x192xf32> to vector<8x64xf32>
    %122 = arith.mulf %121, %102 : vector<8x64xf32>
    %123 = vector.extract_strided_slice %118 {offsets = [0, 0], sizes = [8, 64], strides = [1, 1]} : vector<8x192xf32> to vector<8x64xf32>
    %124 = arith.mulf %123, %120 : vector<8x64xf32>
    %125 = arith.addf %122, %124 : vector<8x64xf32>
    %126 = vector.extract_strided_slice %118 {offsets = [0, 128], sizes = [8, 64], strides = [1, 1]} : vector<8x192xf32> to vector<8x64xf32>
    %127 = math.tanh %125 : vector<8x64xf32>
    %128 = arith.mulf %126, %127 : vector<8x64xf32>
    %c4 = arith.constant 4 : index
    %c0_34 = arith.constant 0 : index
    %c0_35 = arith.constant 0 : index
    %129 = vector.load %arg9[%c4, %c0_34, %c0_35] : memref<8x8x64xf32, #tpu.memory_space<vmem>>, vector<1x8x64xf32>
    %130 = vector.shape_cast %129 : vector<1x8x64xf32> to vector<8x64xf32>
    %131 = vector.shape_cast %128 : vector<8x64xf32> to vector<1x8x64xf32>
    tpu.vector_store %arg9[%c4, %c0_34, %c0_35], %131 {strides = array<i32>} : memref<8x8x64xf32, #tpu.memory_space<vmem>>, vector<1x8x64xf32>,
    %132 = vector.extract_strided_slice %14 {offsets = [40, 0], sizes = [8, 256], strides = [1, 1]} : vector<64x256xf32> to vector<8x256xf32>
    %133 = arith.truncf %128 : vector<8x64xf32> to vector<8x64xbf16>
    %cst_36 = arith.constant dense<0.000000e+00> : vector<8x256xf32>
    %134 = tpu.matmul %133, %3, %cst_36 {dimension_numbers = #tpu.dot_dimension_numbers<[1], [0], [0], [1], [0, 0, 1, 1], [], []>} : vector<8x64xbf16>, vector<64x256xbf16>, vector<8x256xf32> -> vector<8x256xf32>
    %135 = arith.addf %132, %134 : vector<8x256xf32>
    %136 = vector.extract_strided_slice %135 {offsets = [0, 0], sizes = [8, 192], strides = [1, 1]} : vector<8x256xf32> to vector<8x192xf32>
    %137 = arith.negf %136 : vector<8x192xf32>
    %138 = math.exp %137 : vector<8x192xf32>
    %cst_37 = arith.constant 1.000000e+00 : f32
    %139 = vector.broadcast %cst_37 : f32 to vector<8x192xf32>
    %140 = arith.addf %139, %138 : vector<8x192xf32>
    %141 = arith.divf %139, %140 : vector<8x192xf32>
    %142 = vector.extract_strided_slice %135 {offsets = [0, 192], sizes = [8, 64], strides = [1, 1]} : vector<8x256xf32> to vector<8x64xf32>
    %143 = math.tanh %142 : vector<8x64xf32>
    %144 = vector.extract_strided_slice %141 {offsets = [0, 64], sizes = [8, 64], strides = [1, 1]} : vector<8x192xf32> to vector<8x64xf32>
    %145 = arith.mulf %144, %125 : vector<8x64xf32>
    %146 = vector.extract_strided_slice %141 {offsets = [0, 0], sizes = [8, 64], strides = [1, 1]} : vector<8x192xf32> to vector<8x64xf32>
    %147 = arith.mulf %146, %143 : vector<8x64xf32>
    %148 = arith.addf %145, %147 : vector<8x64xf32>
    %149 = vector.extract_strided_slice %141 {offsets = [0, 128], sizes = [8, 64], strides = [1, 1]} : vector<8x192xf32> to vector<8x64xf32>
    %150 = math.tanh %148 : vector<8x64xf32>
    %151 = arith.mulf %149, %150 : vector<8x64xf32>
    %c5 = arith.constant 5 : index
    %c0_38 = arith.constant 0 : index
    %c0_39 = arith.constant 0 : index
    %152 = vector.load %arg9[%c5, %c0_38, %c0_39] : memref<8x8x64xf32, #tpu.memory_space<vmem>>, vector<1x8x64xf32>
    %153 = vector.shape_cast %152 : vector<1x8x64xf32> to vector<8x64xf32>
    %154 = vector.shape_cast %151 : vector<8x64xf32> to vector<1x8x64xf32>
    tpu.vector_store %arg9[%c5, %c0_38, %c0_39], %154 {strides = array<i32>} : memref<8x8x64xf32, #tpu.memory_space<vmem>>, vector<1x8x64xf32>,
    %155 = vector.extract_strided_slice %14 {offsets = [48, 0], sizes = [8, 256], strides = [1, 1]} : vector<64x256xf32> to vector<8x256xf32>
    %156 = arith.truncf %151 : vector<8x64xf32> to vector<8x64xbf16>
    %cst_40 = arith.constant dense<0.000000e+00> : vector<8x256xf32>
    %157 = tpu.matmul %156, %3, %cst_40 {dimension_numbers = #tpu.dot_dimension_numbers<[1], [0], [0], [1], [0, 0, 1, 1], [], []>} : vector<8x64xbf16>, vector<64x256xbf16>, vector<8x256xf32> -> vector<8x256xf32>
    %158 = arith.addf %155, %157 : vector<8x256xf32>
    %159 = vector.extract_strided_slice %158 {offsets = [0, 0], sizes = [8, 192], strides = [1, 1]} : vector<8x256xf32> to vector<8x192xf32>
    %160 = arith.negf %159 : vector<8x192xf32>
    %161 = math.exp %160 : vector<8x192xf32>
    %cst_41 = arith.constant 1.000000e+00 : f32
    %162 = vector.broadcast %cst_41 : f32 to vector<8x192xf32>
    %163 = arith.addf %162, %161 : vector<8x192xf32>
    %164 = arith.divf %162, %163 : vector<8x192xf32>
    %165 = vector.extract_strided_slice %158 {offsets = [0, 192], sizes = [8, 64], strides = [1, 1]} : vector<8x256xf32> to vector<8x64xf32>
    %166 = math.tanh %165 : vector<8x64xf32>
    %167 = vector.extract_strided_slice %164 {offsets = [0, 64], sizes = [8, 64], strides = [1, 1]} : vector<8x192xf32> to vector<8x64xf32>
    %168 = arith.mulf %167, %148 : vector<8x64xf32>
    %169 = vector.extract_strided_slice %164 {offsets = [0, 0], sizes = [8, 64], strides = [1, 1]} : vector<8x192xf32> to vector<8x64xf32>
    %170 = arith.mulf %169, %166 : vector<8x64xf32>
    %171 = arith.addf %168, %170 : vector<8x64xf32>
    %172 = vector.extract_strided_slice %164 {offsets = [0, 128], sizes = [8, 64], strides = [1, 1]} : vector<8x192xf32> to vector<8x64xf32>
    %173 = math.tanh %171 : vector<8x64xf32>
    %174 = arith.mulf %172, %173 : vector<8x64xf32>
    %c6 = arith.constant 6 : index
    %c0_42 = arith.constant 0 : index
    %c0_43 = arith.constant 0 : index
    %175 = vector.load %arg9[%c6, %c0_42, %c0_43] : memref<8x8x64xf32, #tpu.memory_space<vmem>>, vector<1x8x64xf32>
    %176 = vector.shape_cast %175 : vector<1x8x64xf32> to vector<8x64xf32>
    %177 = vector.shape_cast %174 : vector<8x64xf32> to vector<1x8x64xf32>
    tpu.vector_store %arg9[%c6, %c0_42, %c0_43], %177 {strides = array<i32>} : memref<8x8x64xf32, #tpu.memory_space<vmem>>, vector<1x8x64xf32>,
    %178 = vector.extract_strided_slice %14 {offsets = [56, 0], sizes = [8, 256], strides = [1, 1]} : vector<64x256xf32> to vector<8x256xf32>
    %179 = arith.truncf %174 : vector<8x64xf32> to vector<8x64xbf16>
    %cst_44 = arith.constant dense<0.000000e+00> : vector<8x256xf32>
    %180 = tpu.matmul %179, %3, %cst_44 {dimension_numbers = #tpu.dot_dimension_numbers<[1], [0], [0], [1], [0, 0, 1, 1], [], []>} : vector<8x64xbf16>, vector<64x256xbf16>, vector<8x256xf32> -> vector<8x256xf32>
    %181 = arith.addf %178, %180 : vector<8x256xf32>
    %182 = vector.extract_strided_slice %181 {offsets = [0, 0], sizes = [8, 192], strides = [1, 1]} : vector<8x256xf32> to vector<8x192xf32>
    %183 = arith.negf %182 : vector<8x192xf32>
    %184 = math.exp %183 : vector<8x192xf32>
    %cst_45 = arith.constant 1.000000e+00 : f32
    %185 = vector.broadcast %cst_45 : f32 to vector<8x192xf32>
    %186 = arith.addf %185, %184 : vector<8x192xf32>
    %187 = arith.divf %185, %186 : vector<8x192xf32>
    %188 = vector.extract_strided_slice %181 {offsets = [0, 192], sizes = [8, 64], strides = [1, 1]} : vector<8x256xf32> to vector<8x64xf32>
    %189 = math.tanh %188 : vector<8x64xf32>
    %190 = vector.extract_strided_slice %187 {offsets = [0, 64], sizes = [8, 64], strides = [1, 1]} : vector<8x192xf32> to vector<8x64xf32>
    %191 = arith.mulf %190, %171 : vector<8x64xf32>
    %192 = vector.extract_strided_slice %187 {offsets = [0, 0], sizes = [8, 64], strides = [1, 1]} : vector<8x192xf32> to vector<8x64xf32>
    %193 = arith.mulf %192, %189 : vector<8x64xf32>
    %194 = arith.addf %191, %193 : vector<8x64xf32>
    %195 = vector.extract_strided_slice %187 {offsets = [0, 128], sizes = [8, 64], strides = [1, 1]} : vector<8x192xf32> to vector<8x64xf32>
    %196 = math.tanh %194 : vector<8x64xf32>
    %197 = arith.mulf %195, %196 : vector<8x64xf32>
    %c7 = arith.constant 7 : index
    %c0_46 = arith.constant 0 : index
    %c0_47 = arith.constant 0 : index
    %198 = vector.load %arg9[%c7, %c0_46, %c0_47] : memref<8x8x64xf32, #tpu.memory_space<vmem>>, vector<1x8x64xf32>
    %199 = vector.shape_cast %198 : vector<1x8x64xf32> to vector<8x64xf32>
    %200 = vector.shape_cast %197 : vector<8x64xf32> to vector<1x8x64xf32>
    tpu.vector_store %arg9[%c7, %c0_46, %c0_47], %200 {strides = array<i32>} : memref<8x8x64xf32, #tpu.memory_space<vmem>>, vector<1x8x64xf32>,
    %c0_48 = arith.constant 0 : index
    %c0_49 = arith.constant 0 : index
    %c0_50 = arith.constant 0 : index
    %201 = vector.load %arg9[%c0_48, %c0_49, %c0_50] : memref<8x8x64xf32, #tpu.memory_space<vmem>>, vector<8x8x64xf32>
    %202 = vector.shape_cast %197 : vector<8x64xf32> to vector<1x8x64xf32>
    %203 = vector.broadcast %202 : vector<1x8x64xf32> to vector<8x8x64xf32>
    %204 = arith.mulf %201, %203 : vector<8x8x64xf32>
    %cst_51 = arith.constant dense<0.000000e+00> : vector<8x8xf32>
    %205 = vector.multi_reduction <add>, %204, %cst_51 [2] : vector<8x8x64xf32> to vector<8x8xf32>
    %206 = vector.shape_cast %205 : vector<8x8xf32> to vector<8x8x1xf32>
    %cst_52 = arith.constant dense<0xFF800000> : vector<8x1xf32>
    %207 = vector.multi_reduction <maximumf>, %206, %cst_52 [0] : vector<8x8x1xf32> to vector<8x1xf32>
    %208 = vector.shape_cast %207 : vector<8x1xf32> to vector<1x8x1xf32>
    %209 = vector.broadcast %208 : vector<1x8x1xf32> to vector<8x8x1xf32>
    %210 = arith.subf %206, %209 : vector<8x8x1xf32>
    %211 = math.exp %210 : vector<8x8x1xf32>
    %cst_53 = arith.constant dense<0.000000e+00> : vector<8x1xf32>
    %212 = vector.multi_reduction <add>, %211, %cst_53 [0] : vector<8x8x1xf32> to vector<8x1xf32>
    %213 = vector.broadcast %211 : vector<8x8x1xf32> to vector<8x8x64xf32>
    %214 = arith.mulf %213, %201 : vector<8x8x64xf32>
    %cst_54 = arith.constant dense<0.000000e+00> : vector<8x64xf32>
    %215 = vector.multi_reduction <add>, %214, %cst_54 [0] : vector<8x8x64xf32> to vector<8x64xf32>
    %216 = tpu.reciprocal %212 {approx = true} : vector<8x1xf32> -> vector<8x1xf32>
    %217 = vector.broadcast %216 : vector<8x1xf32> to vector<8x64xf32>
    %218 = arith.mulf %215, %217 : vector<8x64xf32>
    %c0_55 = arith.constant 0 : index
    %c0_56 = arith.constant 0 : index
    %219 = vector.load %arg6[%c0_55, %c0_56] : memref<1x64xf32, #tpu.memory_space<vmem>>, vector<1x64xf32>
    %c0_57 = arith.constant 0 : index
    %c0_58 = arith.constant 0 : index
    %220 = vector.load %arg7[%c0_57, %c0_58] : memref<1x1xf32, #tpu.memory_space<vmem>>, vector<1x1xf32>
    %221 = vector.broadcast %219 : vector<1x64xf32> to vector<8x64xf32>
    %222 = arith.mulf %218, %221 : vector<8x64xf32>
    %cst_59 = arith.constant dense<0.000000e+00> : vector<8xf32>
    %223 = vector.multi_reduction <add>, %222, %cst_59 [1] : vector<8x64xf32> to vector<8xf32>
    %224 = vector.shape_cast %223 : vector<8xf32> to vector<8x1xf32>
    %225 = vector.broadcast %220 : vector<1x1xf32> to vector<8x1xf32>
    %226 = arith.addf %224, %225 : vector<8x1xf32>
    %c0_60 = arith.constant 0 : index
    %c0_61 = arith.constant 0 : index
    %227 = vector.load %arg8[%c0_60, %c0_61] : memref<8x1xf32, #tpu.memory_space<vmem>>, vector<8x1xf32>
    tpu.vector_store %arg8[%c0_60, %c0_61], %226 {strides = array<i32>} : memref<8x1xf32, #tpu.memory_space<vmem>>, vector<8x1xf32>,
    return
  }
}

</mosaic_0001>

<bundles_post_ra>
// kernel: tpu_custom_call.1
= control target key start
LH: loop header
LB: loop body
LE: loop exit
PB: predicated region body
PF: predicated region fallthrough
CT: control target
= control target key end

     0   :  { %s1738_s0 = inlined_call_operand.vmem [shape: bf16[64,16], index: 0, kind: input, shape index: {}]   ;;  %s1739_s1 = inlined_call_operand.vmem [shape: bf16[16,64], index: 1, kind: input, shape index: {}]   ;;  %s1740_s2 = inlined_call_operand.vmem [shape: f32[1,64], index: 2, kind: input, shape index: {}]   ;;  %s1741_s3 = inlined_call_operand.hbm [shape: bf16[64,256], index: 3, kind: input, shape index: {}]   ;;  %s1742_s4 = inlined_call_operand.hbm [shape: bf16[64,256], index: 4, kind: input, shape index: {}]   ;;  %s1743_s5 = inlined_call_operand.vmem [shape: f32[1,256], index: 5, kind: input, shape index: {}]   ;;  %s1744_s6 = inlined_call_operand.vmem [shape: f32[1,64], index: 6, kind: input, shape index: {}]   ;;  %s1745_s7 = inlined_call_operand.<no memory space> [shape: f32[1,1], index: 7, kind: input, shape index: {}]   ;;  %s1746_s8 = inlined_call_operand.vmem [shape: f32[8,1], index: 8, kind: output, shape index: {}]  }
   0x1   :  { %v13_v0 = vstv %s1745_s7 }
   0x2   :  { %14 = vst [vmem:[#allocation3] sm:$0x1] %v13_v0 }
   0x3   :  { %15 = vsyncpa [#allocation5], 0 }
   0x4   :  { %16 = vsyncpa [#allocation7], 0  ;;  %s1410_s29 = smov [#allocation4]  }
   0x5   :  { %s28_s30 = sshll.u32 %s1410_s29, 4  ;;  %s29_s30 = int_to_ptr.vmem [resolvable:$true] %s28_s30 }
   0x6   :  { %s1374_s9 = scalar_lea.vmem %s29_s30, 1024  ;;  %p1379_p1 = scmp.lt.s32.totalorder %s29_s30, %s29_s30 }
   0x7   :  { %p1375_p0 = scmp.ne.s32.totalorder %s29_s30, %s1374_s9  ;;  %p1380_p2 = scmp.lt.s32.totalorder %s1374_s9, %s1374_s9 }
   0x9   :  { %p1381_p3 = por %p1380_p2, %p1379_p1 }
   0xb   :  { %p1382_p4 = pnand %p1381_p3, %p1375_p0 }
   0xd   :  { %1385 = shalt.err (!%p1382_p4)
}
   0xe   :  { %s1411_s10 = smov 128   ;;  %s1412_s11 = smov 8  }
   0xf   :  { %34 = dma.hbm_to_vmem [thread:$0]  %s1741_s3, 1024, %s29_s30, [#allocation5], %s1411_s10, %s1411_s10, %s1412_s11  }
  0x10   :  { %s1413_s7 = smov [#allocation6]  }
  0x11   :  { %s40_s14 = sshll.u32 %s1413_s7, 4  ;;  %s41_s14 = int_to_ptr.vmem [resolvable:$true] %s40_s14 }
  0x12   :  { %s1394_s15 = scalar_lea.vmem %s41_s14, 1024  ;;  %p1399_p6 = scmp.lt.s32.totalorder %s41_s14, %s41_s14 }
  0x13   :  { %p1395_p5 = scmp.ne.s32.totalorder %s41_s14, %s1394_s15  ;;  %p1400_p7 = scmp.lt.s32.totalorder %s1394_s15, %s1394_s15 }
  0x15   :  { %p1401_p8 = por %p1400_p7, %p1399_p6 }
  0x17   :  { %p1402_p9 = pnand %p1401_p8, %p1395_p5 }
  0x19   :  { %1405 = shalt.err (!%p1402_p9)
}
  0x1a   :  { %46 = dma.hbm_to_vmem [thread:$0]  %s1742_s4, 1024, %s41_s14, [#allocation7], %s1411_s10, %s1411_s10, %s1412_s11  }
  0x1b   :  { %1406 = dma.done.wait [#allocation5], 1024  }
  0x1c   :  { %1407 = vsyncadd [#allocation5], 4294966272 }
  0x1d   :  { %1408 = dma.done.wait [#allocation7], 1024  }
  0x1e   :  { %1409 = vsyncadd [#allocation7], 4294966272  ;;  %v1223_v1 = vld [vmem:[%s1739_s1] sm:$0xff]   ;;  %vm120_vm0 = vcmask 130048   ;;  %v1225_v3 = vld [vmem:[%s1738_s0 + $0x8] sm:$0xff]   ;;  %v1414_v21 = vmov 0   ;;  %v211_v56 = vlaneseq }
  0x1f   :  { %v1224_v2 = vld [vmem:[%s1738_s0] sm:$0xff]   ;;  %1207 = vmatprep.subr.bf16.mxu0 %v1223_v1  ;;  %v1226_v4 = vld [vmem:[%s1738_s0 + $0x10] sm:$0xff]   ;;  %v1227_v8 = vld [vmem:[%s1738_s0 + $0x18] sm:$0xff]   ;;  %306 = vmatprep.mubr.bf16.mxu1 %v1414_v21  ;;  %vm261_vm1 = vcmask 523264   ;;  %vm1139_vm2 = vcmask 7168  }
  0x20   :  { %1208 = vmatpush3.bf16.msra.mxu0 %v1223_v1  ;;  %1209 = vmatprep.mubr.msk.bf16.mxu0 %vm120_vm0, %v1224_v2  ;;  %v1483_v5 = vld [vmem:[#allocation6 + $0x34] ss:$8 sps:$4 sm:$0xff]   ;;  %v1486_v6 = vld [vmem:[#allocation6 + $0x30] ss:$8 sps:$4 sm:$0xff]   ;;  %v1494_v9 = vld [vmem:[#allocation6 + $0x24] ss:$8 sps:$4 sm:$0xff]  }
  0x21   :  { %398 = vmatprep.subr.bf16.mxu0 %v1483_v5  ;;  %v1231_v7 = vld [vmem:[#allocation4 + $0x34] ss:$8 sps:$4 sm:$0xff]   ;;  %v1235_v10 = vld [vmem:[#allocation4 + $0x30] ss:$8 sps:$4 sm:$0xff]   ;;  %v1496_v11 = vld [vmem:[#allocation6 + $0x20] ss:$8 sps:$4 sm:$0xff]  }
  0x22   :  { %282 = vmatprep.subr.bf16.mxu1 %v1231_v7  ;;  %v1237_v12 = vld [vmem:[#allocation4 + $0x24] ss:$8 sps:$4 sm:$0xff]   ;;  %v1501_v13 = vld [vmem:[#allocation6 + $0x14] ss:$8 sps:$4 sm:$0xff]   ;;  %v1241_v14 = vld [vmem:[#allocation4 + $0x20] ss:$8 sps:$4 sm:$0xff]  }
  0x23   :  { %1210 = vmatmul.mubr.msk.bf16.vlgmr.msra.gmra.mxu0 %vm120_vm0, %v1225_v3  ;;  %283 = vmatpush1.bf16.msra.mxu1 %v1235_v10  ;;  %v1503_v15 = vld [vmem:[#allocation6 + $0x10] ss:$8 sps:$4 sm:$0xff]   ;;  %v1243_v16 = vld [vmem:[#allocation4 + $0x14] ss:$8 sps:$4 sm:$0xff]   ;;  %v1507_v17 = vld [vmem:[#allocation6 + $0x4] ss:$8 sps:$4 sm:$0xff]  }
  0x24   :  { %1213 = vmatprep.mubr.msk.bf16.mxu0 %vm120_vm0, %v1226_v4  ;;  %399 = vmatpush1.bf16.msra.mxu0 %v1486_v6  ;;  %v1247_v18 = vld [vmem:[#allocation4 + $0x10] ss:$8 sps:$4 sm:$0xff]   ;;  %v1509_v19 = vld [vmem:[#allocation6] ss:$8 sps:$4 sm:$0xff]   ;;  %v1249_v20 = vld [vmem:[#allocation4 + $0x4] ss:$8 sps:$4 sm:$0xff]  }
  0x25   :  { %400 = vmatprep.subr.bf16.mxu0 %v1494_v9  ;;  %284 = vmatprep.subr.bf16.mxu1 %v1237_v12  ;;  %v1251_v22 = vld [vmem:[#allocation4] ss:$8 sps:$4 sm:$0xff]   ;;  %v1147_v25 = vld [vmem:[%s1740_s2] ss:$0 sm:$0xff]  ;;  %v212_v57 = vshrl.u32 %v211_v56, 7 }
  0x26   :  { %v79_v59 = vld [vmem:[%s1743_s5] sm:$0x3]  ;;  %s1415_s5 = smov 64  }
  0x27   :  { %285 = vmatpush1.bf16.msra.mxu1 %v1241_v14  ;;  %v217_v58 = vsub.s32 1, %v212_v57  ;;  %v213_v60 = vsub.s32 0, %v212_v57 }
  0x28   :  { %401 = vmatpush1.bf16.msra.mxu0 %v1496_v11  ;;  %286 = vmatprep.subr.bf16.mxu1 %v1243_v16 }
  0x29   :  { %402 = vmatprep.subr.bf16.mxu0 %v1501_v13  ;;  %v1549_v61 = vrot.slane %v79_v59, %v217_v58  ;;  %v214_v0 = vrot.slane %v79_v59, %v213_v60 }
  0x2b   :  { %1214 = vmatmul.mubr.msk.bf16.gmra.mxu0 %vm120_vm0, %v1227_v8  ;;  %287 = vmatpush1.bf16.msra.mxu1 %v1247_v18 }
  0x2c   :  { %403 = vmatpush1.bf16.msra.mxu0 %v1503_v15  ;;  %422 = vmatprep.mubr.bf16.mxu0 %v1414_v21 }
  0x2d   :  { %404 = vmatprep.subr.bf16.mxu0 %v1507_v17  ;;  %288 = vmatprep.subr.bf16.mxu1 %v1249_v20 }
  0x2f   :  { %289 = vmatpush1.bf16.msra.mxu1 %v1251_v22 }
  0x30   :  { %405 = vmatpush1.bf16.msra.mxu0 %v1509_v19  ;;  %555 = vmatprep.subr.bf16.mxu1 %v1483_v5 }
  0x31   :  { %476 = vmatprep.subr.bf16.mxu0 %v1483_v5 }
  0x33   :  { %423 = vmatmul.mubr.bf16.vlgmr.msra.gmra.mxu0 %v1414_v21 }
  0x34   :  { %477 = vmatpush1.bf16.msra.mxu0 %v1486_v6  ;;  %500 = vmatprep.mubr.bf16.mxu0 %v1414_v21 }
  0x35   :  { %478 = vmatprep.subr.bf16.mxu0 %v1494_v9 }
  0x38   :  { %479 = vmatpush1.bf16.msra.mxu0 %v1496_v11 }
  0x39   :  { %480 = vmatprep.subr.bf16.mxu0 %v1501_v13 }
  0x3c   :  { %481 = vmatpush1.bf16.msra.mxu0 %v1503_v15 }
  0x3d   :  { %482 = vmatprep.subr.bf16.mxu0 %v1507_v17 }
  0x40   :  { %483 = vmatpush1.bf16.msra.mxu0 %v1509_v19 }
  0x41   :  { %634 = vmatprep.subr.bf16.mxu0 %v1483_v5 }
  0xe3   :  { %v1211_v23 = vpop.f32.mrf.mxu0 }
  0xe4   :  { %v176_v37 = vadd.f32 %v1211_v23, %v1147_v25 }
  0xe5   :  { %v167_v24 = vpop.f32.mrf.mxu0 }
  0xe6   :  { %v168_v27 = vadd.f32 %v1147_v25, %v167_v24  ;;  %v200_v40 = vmax.f32 %v176_v37, 0.0 }
  0xe7   :  { %v1212_v26 = vpop.f32.mrf.mxu0 }
  0xe8   :  { %v198_v31 = vmax.f32 %v168_v27, 0.0  ;;  %v179_v34 = vadd.f32 %v1212_v26, %v1147_v25 }
  0xe9   :  { %v170_v28 = vpop.f32.mrf.mxu0 }
  0xea   :  { %v171_v29 = vadd.f32 %v1147_v25, %v170_v28  ;;  %v201_v39 = vmax.f32 %v179_v34, 0.0 }
  0xeb   :  { %v1215_v30 = vpop.f32.mrf.mxu0 }
  0xec   :  { %v199_v32 = vmax.f32 %v171_v29, 0.0  ;;  %v207_v43 = vpack.c.bf16 %v201_v39, %v200_v40  ;;  %v192_v46 = vadd.f32 %v1215_v30, %v1147_v25 }
  0xed   :  { %v183_v33 = vpop.f32.mrf.mxu0 }
  0xee   :  { %v206_v35 = vpack.c.bf16 %v199_v32, %v198_v31  ;;  %v184_v41 = vadd.f32 %v1147_v25, %v183_v33  ;;  %v204_v49 = vmax.f32 %v192_v46, 0.0 }
  0xef   :  { %v1216_v36 = vpop.f32.mrf.mxu0 }
  0xf0   :  { %1165 = vmatmul.mubr.msk.bf16.vlgmr.msra.gmra.mxu1 %vm261_vm1, %v206_v35  ;;  %v202_v44 = vmax.f32 %v184_v41, 0.0  ;;  %v195_v47 = vadd.f32 %v1216_v36, %v1147_v25 }
  0xf1   :  { %316 = vmatprep.mubr.bf16.mxu1 %v1414_v21  ;;  %v186_v38 = vpop.f32.mrf.mxu0  ;;  %556 = vmatpush1.bf16.msra.mxu1 %v1486_v6 }
  0xf2   :  { %557 = vmatprep.subr.bf16.mxu1 %v1494_v9  ;;  %v187_v42 = vadd.f32 %v1147_v25, %v186_v38  ;;  %v205_v50 = vmax.f32 %v195_v47, 0.0 }
  0xf3   :  { %v424_v52 = vpop.f32.mrf.mxu0 }
  0xf4   :  { %v203_v45 = vmax.f32 %v187_v42, 0.0  ;;  %v209_v51 = vpack.c.bf16 %v205_v50, %v204_v49 }
  0xf5   :  { %558 = vmatpush1.bf16.msra.mxu1 %v1496_v11  ;;  %v426_v53 = vpop.f32.mrf.mxu0 }
  0xf6   :  { %559 = vmatprep.subr.bf16.mxu1 %v1501_v13  ;;  %v208_v48 = vpack.c.bf16 %v203_v45, %v202_v44 }
  0xf7   :  { %v428_v54 = vpop.f32.mrf.mxu0 }
  0xf8   :  { %1166 = vmatmul.mubr.msk.bf16.gmra.mxu1 %vm261_vm1, %v207_v43 }
  0xf9   :  { %326 = vmatprep.mubr.bf16.mxu1 %v1414_v21  ;;  %560 = vmatpush1.bf16.msra.mxu1 %v1503_v15  ;;  %v429_v55 = vpop.f32.mrf.mxu0 }
  0xfa   :  { %561 = vmatprep.subr.bf16.mxu1 %v1507_v17 }
  0xfd   :  { %562 = vmatpush1.bf16.msra.mxu1 %v1509_v19 }
  0xfe   :  { %713 = vmatprep.subr.bf16.mxu1 %v1483_v5 }
 0x100   :  { %1167 = vmatmul.mubr.msk.bf16.gmra.mxu1 %vm261_vm1, %v208_v48 }
 0x101   :  { %336 = vmatprep.mubr.bf16.mxu1 %v1414_v21 }
 0x108   :  { %1168 = vmatmul.mubr.msk.bf16.gmra.mxu1 %vm261_vm1, %v209_v51 }
 0x109   :  { %579 = vmatprep.mubr.bf16.mxu1 %v1414_v21 }
 0x1b0   :  { %v308_v62 = vpop.f32.mrf.mxu1 }
 0x1b1   :  { %v309_v37 = vadd.f32 %v308_v62, %v214_v0 }
 0x1b2   :  { %v310_v63 = vpop.f32.mrf.mxu1 }
 0x1b3   :  { %v311_v1 = vadd.f32 %v310_v63, %v1549_v61  ;;  %v431_v38 = vadd.f32 %v424_v52, %v309_v37 }
 0x1b4   :  { %v312_v2 = vpop.f32.mrf.mxu1 }
 0x1b5   :  { %v432_v3 = vadd.f32 %v426_v53, %v311_v1  ;;  %v1552_v4 = vadd.f32 %v312_v2, %v214_v0  ;;  %v1177_v39 = vmul.f32 -1.442695, %v431_v38 }
 0x1b6   :  { %v1554_v7 = vpop.f32.mrf.mxu1 }
 0x1b7   :  { %1252 = vtanh.f32 %v432_v3  ;;  %v1178_v49 = vmul.f32 -1.442695, %v432_v3  ;;  %v315_v57 = vadd.f32 %v1554_v7, %v1549_v61 }
 0x1b8   :  { %v318_v8 = vpop.f32.mrf.mxu1  ;;  %1254 = vpow2.f32 %v1177_v39 }
 0x1b9   :  { %v1556_v10 = vadd.f32 %v318_v8, %v214_v0 }
 0x1ba   :  { %v1558_v12 = vpop.f32.mrf.mxu1 }
 0x1bc   :  { %v322_v14 = vpop.f32.mrf.mxu1 }
 0x1bd   :  { %v1560_v16 = vadd.f32 %v322_v14, %v214_v0 }
 0x1be   :  { %v324_v18 = vpop.f32.mrf.mxu1 }
 0x1bf   :  { %v1563_v20 = vadd.f32 %v324_v18, %v1549_v61 }
 0x1c0   :  { %v328_v22 = vpop.f32.mrf.mxu1 }
 0x1c1   :  { %v1565_v23 = vadd.f32 %v328_v22, %v214_v0 }
 0x1c2   :  { %v330_v24 = vpop.f32.mrf.mxu1 }
 0x1c3   :  { %v1568_v25 = vadd.f32 %v330_v24, %v1549_v61 }
 0x1c4   :  { %v332_v26 = vpop.f32.mrf.mxu1  ;;  %v1253_v27 = vpop.eup %1252 }
 0x1c5   :  { %v1570_v28 = vadd.f32 %v332_v26, %v214_v0  ;;  %448 = vrot.lane.b32.xlu0 %v1253_v27, %s1415_s5  ;;  %v1255_v40 = vpop.eup %1254 }
 0x1c6   :  { %v334_v29 = vpop.f32.mrf.mxu1  ;;  %v439_v41 = vadd.f32 1.0, %v1255_v40  ;;  %v321_v40 = vadd.f32 %v1558_v12, %v1549_v61 }
 0x1c7   :  { %v1574_v30 = vadd.f32 %v334_v29, %v1549_v61 }
 0x1c8   :  { %v338_v31 = vpop.f32.mrf.mxu1  ;;  %1256 = vrcp.f32 %v439_v41 }
 0x1c9   :  { %v1576_v32 = vadd.f32 %v338_v31, %v214_v0 }
 0x1ca   :  { %v340_v33 = vpop.f32.mrf.mxu1 }
 0x1cb   :  { %v1579_v34 = vadd.f32 %v340_v33, %v1549_v61 }
 0x1cc   :  { %v342_v35 = vpop.f32.mrf.mxu1 }
 0x1cd   :  { %v1581_v36 = vadd.f32 %v342_v35, %v214_v0 }
 0x1ce   :  { %v1613_v38 = vpop.f32.mrf.mxu1 }
 0x1d5   :  { %v1257_v42 = vpop.eup %1256 }
 0x1d6   :  { %v446_v45 = vmul.f32 0.0, %v1257_v42 }
 0x237   :  { %v449_v43 = vpop.permute.xlu0 %448 }
 0x238   :  { %v451_v44 = vmul.f32 %v1257_v42, %v449_v43 }
 0x23a   :  { %453 = vrot.lane.b32.xlu0 %v451_v44, %s1415_s5 }
 0x2ac   :  { %v454_v46 = vpop.permute.xlu0 %453 }
 0x2ad   :  { %v456_v47 = vadd.f32 %v454_v46, %v446_v45 }
 0x2af   :  { %1258 = vtanh.f32 %v456_v47 }
 0x2b0   :  { %1260 = vpow2.f32 %v1178_v49 }
 0x2bc   :  { %v1259_v48 = vpop.eup %1258 }
 0x2bd   :  { %459 = vrot.lane.b32.xlu1 %v1259_v48, %s1415_s5  ;;  %v1261_v50 = vpop.eup %1260 }
 0x2be   :  { %v440_v51 = vadd.f32 1.0, %v1261_v50 }
 0x2c0   :  { %1262 = vrcp.f32 %v440_v51 }
 0x2cd   :  { %v1263_v52 = vpop.eup %1262 }
 0x32f   :  { %v460_v53 = vpop.permute.xlu1 %459 }
 0x330   :  { %v462_v54 = vmul.f32 %v1263_v52, %v460_v53 }
 0x332   :  { %463 = vst.msk [vmem:[#allocation2] sm:$0xff] %vm261_vm1, %v462_v54  ;;  %v464_v55 = vpack.c.bf16 %v462_v54, %v462_v54 }
 0x334   :  { %1179 = vmatmul.mubr.msk.bf16.vlgmr.msra.gmra.mxu0 %vm261_vm1, %v464_v55 }
 0x335   :  { %635 = vmatpush1.bf16.msra.mxu0 %v1486_v6  ;;  %658 = vmatprep.mubr.bf16.mxu0 %v1414_v21 }
 0x336   :  { %636 = vmatprep.subr.bf16.mxu0 %v1494_v9 }
 0x339   :  { %637 = vmatpush1.bf16.msra.mxu0 %v1496_v11 }
 0x33a   :  { %638 = vmatprep.subr.bf16.mxu0 %v1501_v13 }
 0x33d   :  { %639 = vmatpush1.bf16.msra.mxu0 %v1503_v15 }
 0x33e   :  { %640 = vmatprep.subr.bf16.mxu0 %v1507_v17 }
 0x341   :  { %641 = vmatpush1.bf16.msra.mxu0 %v1509_v19 }
 0x342   :  { %792 = vmatprep.subr.bf16.mxu0 %v1483_v5 }
 0x3f4   :  { %v502_v56 = vpop.f32.mrf.mxu0 }
 0x3f5   :  { %v509_v58 = vadd.f32 %v502_v56, %v1552_v4 }
 0x3f6   :  { %v504_v59 = vpop.f32.mrf.mxu0 }
 0x3f7   :  { %v510_v60 = vadd.f32 %v504_v59, %v315_v57  ;;  %v1180_v1 = vmul.f32 -1.442695, %v509_v58 }
 0x3f8   :  { %v506_v62 = vpop.f32.mrf.mxu0 }
 0x3f9   :  { %1264 = vtanh.f32 %v510_v60  ;;  %v1181_v26 = vmul.f32 -1.442695, %v510_v60 }
 0x3fa   :  { %v507_v63 = vpop.f32.mrf.mxu0  ;;  %1266 = vpow2.f32 %v1180_v1 }
 0x406   :  { %v1265_v0 = vpop.eup %1264 }
 0x407   :  { %526 = vrot.lane.b32.xlu1 %v1265_v0, %s1415_s5  ;;  %v1267_v2 = vpop.eup %1266 }
 0x408   :  { %v517_v3 = vadd.f32 1.0, %v1267_v2 }
 0x40a   :  { %1268 = vrcp.f32 %v517_v3 }
 0x417   :  { %v1269_v8 = vpop.eup %1268 }
 0x418   :  { %v524_v7 = vmul.f32 %v1269_v8, %v456_v47 }
 0x479   :  { %v527_v14 = vpop.permute.xlu1 %526 }
 0x47a   :  { %v529_v18 = vmul.f32 %v1269_v8, %v527_v14 }
 0x47c   :  { %531 = vrot.lane.b32.xlu0 %v529_v18, %s1415_s5 }
 0x4ee   :  { %v532_v4 = vpop.permute.xlu0 %531 }
 0x4ef   :  { %v534_v22 = vadd.f32 %v532_v4, %v524_v7 }
 0x4f1   :  { %1270 = vtanh.f32 %v534_v22 }
 0x4f2   :  { %1272 = vpow2.f32 %v1181_v26 }
 0x4fe   :  { %v1271_v24 = vpop.eup %1270 }
 0x4ff   :  { %537 = vrot.lane.b32.xlu1 %v1271_v24, %s1415_s5  ;;  %v1273_v27 = vpop.eup %1272 }
 0x500   :  { %v518_v29 = vadd.f32 1.0, %v1273_v27 }
 0x502   :  { %1274 = vrcp.f32 %v518_v29 }
 0x50f   :  { %v1275_v31 = vpop.eup %1274 }
 0x571   :  { %v538_v33 = vpop.permute.xlu1 %537 }
 0x572   :  { %v540_v35 = vmul.f32 %v1275_v31, %v538_v33 }
 0x574   :  { %542 = vst.msk [vmem:[#allocation2 + $0x8] sm:$0xff] %vm261_vm1, %v540_v35  ;;  %v543_v37 = vpack.c.bf16 %v540_v35, %v540_v35 }
 0x576   :  { %1182 = vmatmul.mubr.msk.bf16.vlgmr.msra.gmra.mxu1 %vm261_vm1, %v543_v37 }
 0x577   :  { %714 = vmatpush1.bf16.msra.mxu1 %v1486_v6  ;;  %737 = vmatprep.mubr.bf16.mxu1 %v1414_v21 }
 0x578   :  { %715 = vmatprep.subr.bf16.mxu1 %v1494_v9 }
 0x57b   :  { %716 = vmatpush1.bf16.msra.mxu1 %v1496_v11 }
 0x57c   :  { %717 = vmatprep.subr.bf16.mxu1 %v1501_v13 }
 0x57f   :  { %718 = vmatpush1.bf16.msra.mxu1 %v1503_v15 }
 0x580   :  { %719 = vmatprep.subr.bf16.mxu1 %v1507_v17 }
 0x583   :  { %720 = vmatpush1.bf16.msra.mxu1 %v1509_v19 }
 0x584   :  { %871 = vmatprep.subr.bf16.mxu1 %v1483_v5 }
 0x636   :  { %v581_v39 = vpop.f32.mrf.mxu1 }
 0x637   :  { %v588_v41 = vadd.f32 %v581_v39, %v1556_v10 }
 0x638   :  { %v583_v42 = vpop.f32.mrf.mxu1 }
 0x639   :  { %v589_v43 = vadd.f32 %v583_v42, %v321_v40  ;;  %v1183_v47 = vmul.f32 -1.442695, %v588_v41 }
 0x63a   :  { %v585_v44 = vpop.f32.mrf.mxu1 }
 0x63b   :  { %1276 = vtanh.f32 %v589_v43  ;;  %v1184_v55 = vmul.f32 -1.442695, %v589_v43 }
 0x63c   :  { %v586_v45 = vpop.f32.mrf.mxu1  ;;  %1278 = vpow2.f32 %v1183_v47 }
 0x648   :  { %v1277_v46 = vpop.eup %1276 }
 0x649   :  { %605 = vrot.lane.b32.xlu0 %v1277_v46, %s1415_s5  ;;  %v1279_v48 = vpop.eup %1278 }
 0x64a   :  { %v596_v49 = vadd.f32 1.0, %v1279_v48 }
 0x64c   :  { %1280 = vrcp.f32 %v596_v49 }
 0x659   :  { %v1281_v50 = vpop.eup %1280 }
 0x65a   :  { %v603_v12 = vmul.f32 %v1281_v50, %v534_v22 }
 0x6bb   :  { %v606_v51 = vpop.permute.xlu0 %605 }
 0x6bc   :  { %v608_v52 = vmul.f32 %v1281_v50, %v606_v51 }
 0x6be   :  { %610 = vrot.lane.b32.xlu1 %v608_v52, %s1415_s5 }
 0x730   :  { %v611_v10 = vpop.permute.xlu1 %610 }
 0x731   :  { %v613_v53 = vadd.f32 %v611_v10, %v603_v12 }
 0x733   :  { %1282 = vtanh.f32 %v613_v53 }
 0x734   :  { %1284 = vpow2.f32 %v1184_v55 }
 0x740   :  { %v1283_v54 = vpop.eup %1282 }
 0x741   :  { %616 = vrot.lane.b32.xlu0 %v1283_v54, %s1415_s5  ;;  %v1285_v56 = vpop.eup %1284 }
 0x742   :  { %v597_v57 = vadd.f32 1.0, %v1285_v56 }
 0x744   :  { %1286 = vrcp.f32 %v597_v57 }
 0x751   :  { %v1287_v58 = vpop.eup %1286 }
 0x7b3   :  { %v617_v59 = vpop.permute.xlu0 %616 }
 0x7b4   :  { %v619_v60 = vmul.f32 %v1287_v58, %v617_v59 }
 0x7b6   :  { %621 = vst.msk [vmem:[#allocation2 + $0x10] sm:$0xff] %vm261_vm1, %v619_v60  ;;  %v622_v62 = vpack.c.bf16 %v619_v60, %v619_v60 }
 0x7b8   :  { %1185 = vmatmul.mubr.msk.bf16.vlgmr.msra.gmra.mxu0 %vm261_vm1, %v622_v62 }
 0x7b9   :  { %793 = vmatpush1.bf16.msra.mxu0 %v1486_v6  ;;  %816 = vmatprep.mubr.bf16.mxu0 %v1414_v21 }
 0x7ba   :  { %794 = vmatprep.subr.bf16.mxu0 %v1494_v9 }
 0x7bd   :  { %795 = vmatpush1.bf16.msra.mxu0 %v1496_v11 }
 0x7be   :  { %796 = vmatprep.subr.bf16.mxu0 %v1501_v13 }
 0x7c1   :  { %797 = vmatpush1.bf16.msra.mxu0 %v1503_v15 }
 0x7c2   :  { %798 = vmatprep.subr.bf16.mxu0 %v1507_v17 }
 0x7c5   :  { %799 = vmatpush1.bf16.msra.mxu0 %v1509_v19 }
 0x7c6   :  { %950 = vmatprep.subr.bf16.mxu0 %v1483_v5 }
 0x878   :  { %v660_v63 = vpop.f32.mrf.mxu0 }
 0x879   :  { %v667_v0 = vadd.f32 %v660_v63, %v1560_v16 }
 0x87a   :  { %v662_v1 = vpop.f32.mrf.mxu0 }
 0x87b   :  { %v668_v2 = vadd.f32 %v662_v1, %v1563_v20  ;;  %v1186_v18 = vmul.f32 -1.442695, %v667_v0 }
 0x87c   :  { %v664_v3 = vpop.f32.mrf.mxu0 }
 0x87d   :  { %1288 = vtanh.f32 %v668_v2  ;;  %v1187_v29 = vmul.f32 -1.442695, %v668_v2 }
 0x87e   :  { %v665_v8 = vpop.f32.mrf.mxu0  ;;  %1290 = vpow2.f32 %v1186_v18 }
 0x88a   :  { %v1289_v14 = vpop.eup %1288 }
 0x88b   :  { %684 = vrot.lane.b32.xlu1 %v1289_v14, %s1415_s5  ;;  %v1291_v7 = vpop.eup %1290 }
 0x88c   :  { %v675_v4 = vadd.f32 1.0, %v1291_v7 }
 0x88e   :  { %1292 = vrcp.f32 %v675_v4 }
 0x89b   :  { %v1293_v22 = vpop.eup %1292 }
 0x89c   :  { %v682_v16 = vmul.f32 %v1293_v22, %v613_v53 }
 0x8fd   :  { %v685_v24 = vpop.permute.xlu1 %684 }
 0x8fe   :  { %v687_v5 = vmul.f32 %v1293_v22, %v685_v24 }
 0x900   :  { %689 = vrot.lane.b32.xlu0 %v687_v5, %s1415_s5 }
 0x972   :  { %v690_v26 = vpop.permute.xlu0 %689 }
 0x973   :  { %v692_v27 = vadd.f32 %v690_v26, %v682_v16 }
 0x975   :  { %1294 = vtanh.f32 %v692_v27 }
 0x976   :  { %1296 = vpow2.f32 %v1187_v29 }
 0x982   :  { %v1295_v20 = vpop.eup %1294 }
 0x983   :  { %695 = vrot.lane.b32.xlu1 %v1295_v20, %s1415_s5  ;;  %v1297_v31 = vpop.eup %1296 }
 0x984   :  { %v676_v33 = vadd.f32 1.0, %v1297_v31 }
 0x986   :  { %1298 = vrcp.f32 %v676_v33 }
 0x993   :  { %v1299_v35 = vpop.eup %1298 }
 0x9f5   :  { %v696_v37 = vpop.permute.xlu1 %695 }
 0x9f6   :  { %v698_v39 = vmul.f32 %v1299_v35, %v696_v37 }
 0x9f8   :  { %700 = vst.msk [vmem:[#allocation2 + $0x18] sm:$0xff] %vm261_vm1, %v698_v39  ;;  %v701_v40 = vpack.c.bf16 %v698_v39, %v698_v39 }
 0x9fa   :  { %1188 = vmatmul.mubr.msk.bf16.vlgmr.msra.gmra.mxu1 %vm261_vm1, %v701_v40 }
 0x9fb   :  { %872 = vmatpush1.bf16.msra.mxu1 %v1486_v6  ;;  %895 = vmatprep.mubr.bf16.mxu1 %v1414_v21 }
 0x9fc   :  { %873 = vmatprep.subr.bf16.mxu1 %v1494_v9 }
 0x9ff   :  { %874 = vmatpush1.bf16.msra.mxu1 %v1496_v11 }
 0xa00   :  { %875 = vmatprep.subr.bf16.mxu1 %v1501_v13 }
 0xa03   :  { %876 = vmatpush1.bf16.msra.mxu1 %v1503_v15 }
 0xa04   :  { %877 = vmatprep.subr.bf16.mxu1 %v1507_v17 }
 0xa07   :  { %878 = vmatpush1.bf16.msra.mxu1 %v1509_v19 }
 0xaba   :  { %v739_v41 = vpop.f32.mrf.mxu1 }
 0xabb   :  { %v746_v42 = vadd.f32 %v739_v41, %v1565_v23 }
 0xabc   :  { %v741_v43 = vpop.f32.mrf.mxu1 }
 0xabd   :  { %v747_v44 = vadd.f32 %v741_v43, %v1568_v25  ;;  %v1189_v48 = vmul.f32 -1.442695, %v746_v42 }
 0xabe   :  { %v743_v45 = vpop.f32.mrf.mxu1 }
 0xabf   :  { %1300 = vtanh.f32 %v747_v44  ;;  %v1190_v54 = vmul.f32 -1.442695, %v747_v44 }
 0xac0   :  { %v744_v46 = vpop.f32.mrf.mxu1  ;;  %1302 = vpow2.f32 %v1189_v48 }
 0xacc   :  { %v1301_v47 = vpop.eup %1300 }
 0xacd   :  { %763 = vrot.lane.b32.xlu0 %v1301_v47, %s1415_s5  ;;  %v1303_v49 = vpop.eup %1302 }
 0xace   :  { %v754_v50 = vadd.f32 1.0, %v1303_v49 }
 0xad0   :  { %1304 = vrcp.f32 %v754_v50 }
 0xadd   :  { %v1305_v51 = vpop.eup %1304 }
 0xade   :  { %v761_v23 = vmul.f32 %v1305_v51, %v692_v27 }
 0xb3f   :  { %v764_v52 = vpop.permute.xlu0 %763 }
 0xb40   :  { %v766_v12 = vmul.f32 %v1305_v51, %v764_v52 }
 0xb42   :  { %768 = vrot.lane.b32.xlu1 %v766_v12, %s1415_s5  ;;  %v345_v12 = vadd.f32 %v1613_v38, %v1549_v61 }
 0xbb4   :  { %v769_v10 = vpop.permute.xlu1 %768 }
 0xbb5   :  { %v771_v53 = vadd.f32 %v769_v10, %v761_v23 }
 0xbb7   :  { %1306 = vtanh.f32 %v771_v53 }
 0xbb8   :  { %1308 = vpow2.f32 %v1190_v54 }
 0xbc4   :  { %v1307_v25 = vpop.eup %1306 }
 0xbc5   :  { %774 = vrot.lane.b32.xlu0 %v1307_v25, %s1415_s5  ;;  %v1309_v55 = vpop.eup %1308 }
 0xbc6   :  { %v755_v56 = vadd.f32 1.0, %v1309_v55 }
 0xbc8   :  { %1310 = vrcp.f32 %v755_v56 }
 0xbd5   :  { %v1311_v57 = vpop.eup %1310 }
 0xc37   :  { %v775_v58 = vpop.permute.xlu0 %774 }
 0xc38   :  { %v777_v59 = vmul.f32 %v1311_v57, %v775_v58 }
 0xc3a   :  { %779 = vst.msk [vmem:[#allocation2 + $0x20] sm:$0xff] %vm261_vm1, %v777_v59  ;;  %v780_v60 = vpack.c.bf16 %v777_v59, %v777_v59 }
 0xc3c   :  { %1191 = vmatmul.mubr.msk.bf16.vlgmr.msra.gmra.mxu0 %vm261_vm1, %v780_v60 }
 0xc3d   :  { %951 = vmatpush1.bf16.msra.mxu0 %v1486_v6  ;;  %974 = vmatprep.mubr.bf16.mxu0 %v1414_v21 }
 0xc3e   :  { %952 = vmatprep.subr.bf16.mxu0 %v1494_v9 }
 0xc41   :  { %953 = vmatpush1.bf16.msra.mxu0 %v1496_v11 }
 0xc42   :  { %954 = vmatprep.subr.bf16.mxu0 %v1501_v13 }
 0xc45   :  { %955 = vmatpush1.bf16.msra.mxu0 %v1503_v15 }
 0xc46   :  { %956 = vmatprep.subr.bf16.mxu0 %v1507_v17 }
 0xc49   :  { %957 = vmatpush1.bf16.msra.mxu0 %v1509_v19 }
 0xcfc   :  { %v818_v62 = vpop.f32.mrf.mxu0 }
 0xcfd   :  { %v825_v63 = vadd.f32 %v818_v62, %v1570_v28 }
 0xcfe   :  { %v820_v0 = vpop.f32.mrf.mxu0 }
 0xcff   :  { %v826_v6 = vadd.f32 %v820_v0, %v1574_v30  ;;  %v1192_v11 = vmul.f32 -1.442695, %v825_v63 }
 0xd00   :  { %v822_v1 = vpop.f32.mrf.mxu0 }
 0xd01   :  { %1312 = vtanh.f32 %v826_v6  ;;  %v1193_v14 = vmul.f32 -1.442695, %v826_v6 }
 0xd02   :  { %v823_v21 = vpop.f32.mrf.mxu0  ;;  %1314 = vpow2.f32 %v1192_v11 }
 0xd0e   :  { %v1313_v9 = vpop.eup %1312 }
 0xd0f   :  { %842 = vrot.lane.b32.xlu1 %v1313_v9, %s1415_s5  ;;  %v1315_v13 = vpop.eup %1314 }
 0xd10   :  { %v833_v15 = vadd.f32 1.0, %v1315_v13  ;;  %v1682_v13 = vld [vmem:[#allocation2 + $0x8] sm:$0xff] }
 0xd12   :  { %1316 = vrcp.f32 %v833_v15  ;;  %v1684_v15 = vld [vmem:[#allocation2] sm:$0xff] }
 0xd1f   :  { %v1317_v17 = vpop.eup %1316 }
 0xd20   :  { %v840_v28 = vmul.f32 %v1317_v17, %v771_v53 }
 0xd81   :  { %v843_v2 = vpop.permute.xlu1 %842 }
 0xd82   :  { %v845_v19 = vmul.f32 %v1317_v17, %v843_v2 }
 0xd84   :  { %847 = vrot.lane.b32.xlu0 %v845_v19, %s1415_s5  ;;  %v1689_v19 = vld [vmem:[#allocation2 + $0x20] sm:$0xff] }
 0xdf6   :  { %v848_v3 = vpop.permute.xlu0 %847 }
 0xdf7   :  { %v850_v8 = vadd.f32 %v848_v3, %v840_v28  ;;  %v1691_v28 = vld [vmem:[#allocation2 + $0x10] sm:$0xff] }
 0xdf9   :  { %1318 = vtanh.f32 %v850_v8 }
 0xdfa   :  { %1320 = vpow2.f32 %v1193_v14 }
 0xe06   :  { %v1319_v30 = vpop.eup %1318 }
 0xe07   :  { %853 = vrot.lane.b32.xlu1 %v1319_v30, %s1415_s5  ;;  %v1321_v18 = vpop.eup %1320 }
 0xe08   :  { %v834_v7 = vadd.f32 1.0, %v1321_v18 }
 0xe0a   :  { %1322 = vrcp.f32 %v834_v7  ;;  %v1699_v7 = vld [vmem:[#allocation2 + $0x18] sm:$0xff] }
 0xe17   :  { %v1323_v4 = vpop.eup %1322 }
 0xe79   :  { %v854_v22 = vpop.permute.xlu1 %853 }
 0xe7a   :  { %v856_v24 = vmul.f32 %v1323_v4, %v854_v22 }
 0xe7c   :  { %858 = vst.msk [vmem:[#allocation2 + $0x28] sm:$0xff] %vm261_vm1, %v856_v24  ;;  %v859_v5 = vpack.c.bf16 %v856_v24, %v856_v24 }
 0xe7e   :  { %1194 = vmatmul.mubr.msk.bf16.vlgmr.msra.gmra.mxu1 %vm261_vm1, %v859_v5 }
 0xf3e   :  { %v897_v16 = vpop.f32.mrf.mxu1 }
 0xf3f   :  { %v904_v26 = vadd.f32 %v897_v16, %v1576_v32  ;;  %v1705_v16 = vld [vmem:[#allocation2 + $0x28] sm:$0xff] }
 0xf40   :  { %v899_v27 = vpop.f32.mrf.mxu1 }
 0xf41   :  { %v905_v20 = vadd.f32 %v899_v27, %v1579_v34  ;;  %v1195_v35 = vmul.f32 -1.442695, %v904_v26 }
 0xf42   :  { %v901_v29 = vpop.f32.mrf.mxu1 }
 0xf43   :  { %1324 = vtanh.f32 %v905_v20  ;;  %v1196_v45 = vmul.f32 -1.442695, %v905_v20 }
 0xf44   :  { %v902_v31 = vpop.f32.mrf.mxu1  ;;  %1326 = vpow2.f32 %v1195_v35 }
 0xf50   :  { %v1325_v33 = vpop.eup %1324 }
 0xf51   :  { %921 = vrot.lane.b32.xlu0 %v1325_v33, %s1415_s5  ;;  %v1327_v37 = vpop.eup %1326 }
 0xf52   :  { %v912_v39 = vadd.f32 1.0, %v1327_v37 }
 0xf54   :  { %1328 = vrcp.f32 %v912_v39 }
 0xf61   :  { %v1329_v40 = vpop.eup %1328 }
 0xf62   :  { %v919_v32 = vmul.f32 %v1329_v40, %v850_v8 }
 0xfc3   :  { %v922_v41 = vpop.permute.xlu0 %921 }
 0xfc4   :  { %v924_v42 = vmul.f32 %v1329_v40, %v922_v41 }
 0xfc6   :  { %926 = vrot.lane.b32.xlu1 %v924_v42, %s1415_s5 }
0x1038   :  { %v927_v43 = vpop.permute.xlu1 %926 }
0x1039   :  { %v929_v44 = vadd.f32 %v927_v43, %v919_v32 }
0x103b   :  { %1330 = vtanh.f32 %v929_v44 }
0x103c   :  { %1332 = vpow2.f32 %v1196_v45 }
0x1048   :  { %v1331_v34 = vpop.eup %1330 }
0x1049   :  { %932 = vrot.lane.b32.xlu0 %v1331_v34, %s1415_s5  ;;  %v1333_v46 = vpop.eup %1332 }
0x104a   :  { %v913_v47 = vadd.f32 1.0, %v1333_v46 }
0x104c   :  { %1334 = vrcp.f32 %v913_v47 }
0x1059   :  { %v1335_v48 = vpop.eup %1334 }
0x10bb   :  { %v933_v49 = vpop.permute.xlu0 %932 }
0x10bc   :  { %v935_v50 = vmul.f32 %v1335_v48, %v933_v49 }
0x10be   :  { %937 = vst.msk [vmem:[#allocation2 + $0x30] sm:$0xff] %vm261_vm1, %v935_v50  ;;  %v938_v51 = vpack.c.bf16 %v935_v50, %v935_v50 }
0x10c0   :  { %1197 = vmatmul.mubr.msk.bf16.vlgmr.msra.gmra.mxu0 %vm261_vm1, %v938_v51 }
0x10c5   :  { %v1697_v18 = vld [vmem:[#allocation2 + $0x30] sm:$0xff] }
0x1180   :  { %v976_v52 = vpop.f32.mrf.mxu0 }
0x1181   :  { %v983_v23 = vadd.f32 %v976_v52, %v1581_v36 }
0x1182   :  { %v978_v10 = vpop.f32.mrf.mxu0 }
0x1183   :  { %v984_v53 = vadd.f32 %v978_v10, %v345_v12  ;;  %v1198_v56 = vmul.f32 -1.442695, %v983_v23 }
0x1184   :  { %v980_v25 = vpop.f32.mrf.mxu0 }
0x1185   :  { %1336 = vtanh.f32 %v984_v53  ;;  %v1199_v0 = vmul.f32 -1.442695, %v984_v53 }
0x1186   :  { %v981_v54 = vpop.f32.mrf.mxu0  ;;  %1338 = vpow2.f32 %v1198_v56 }
0x1192   :  { %v1337_v55 = vpop.eup %1336 }
0x1193   :  { %1000 = vrot.lane.b32.xlu1 %v1337_v55, %s1415_s5  ;;  %v1339_v57 = vpop.eup %1338 }
0x1194   :  { %v991_v58 = vadd.f32 1.0, %v1339_v57 }
0x1196   :  { %1340 = vrcp.f32 %v991_v58 }
0x11a3   :  { %v1341_v59 = vpop.eup %1340 }
0x11a4   :  { %v998_v61 = vmul.f32 %v1341_v59, %v929_v44 }
0x1205   :  { %v1001_v60 = vpop.permute.xlu1 %1000 }
0x1206   :  { %v1003_v62 = vmul.f32 %v1341_v59, %v1001_v60 }
0x1208   :  { %1005 = vrot.lane.b32.xlu0 %v1003_v62, %s1415_s5 }
0x127a   :  { %v1006_v36 = vpop.permute.xlu0 %1005 }
0x127b   :  { %v1008_v38 = vadd.f32 %v1006_v36, %v998_v61 }
0x127d   :  { %1342 = vtanh.f32 %v1008_v38 }
0x127e   :  { %1344 = vpow2.f32 %v1199_v0 }
0x128a   :  { %v1343_v63 = vpop.eup %1342 }
0x128b   :  { %1011 = vrot.lane.b32.xlu1 %v1343_v63, %s1415_s5  ;;  %v1345_v6 = vpop.eup %1344 }
0x128c   :  { %v992_v1 = vadd.f32 1.0, %v1345_v6 }
0x128e   :  { %1346 = vrcp.f32 %v992_v1 }
0x129b   :  { %v1347_v21 = vpop.eup %1346 }
0x12fd   :  { %v1012_v9 = vpop.permute.xlu1 %1011 }
0x12fe   :  { %v1014_v11 = vmul.f32 %v1347_v21, %v1012_v9 }
0x1300   :  { %1016 = vst.msk [vmem:[#allocation2 + $0x38] sm:$0xff] %vm261_vm1, %v1014_v11  ;;  %v1026_v17 = vmul.f32 %v1682_v13, %v1014_v11  ;;  %v1025_v2 = vmul.f32 %v1684_v15, %v1014_v11  ;;  %v1029_v30 = vmul.f32 %v1689_v19, %v1014_v11  ;;  %v1027_v14 = vmul.f32 %v1691_v28, %v1014_v11 }
0x1301   :  { %v1031_v24 = vmul.f32 %v1697_v18, %v1014_v11  ;;  %v1028_v5 = vmul.f32 %v1699_v7, %v1014_v11  ;;  %v1030_v20 = vmul.f32 %v1705_v16, %v1014_v11 }
0x1302   :  { %v1036_v3 = vsel %vm261_vm1, %v1026_v17, 0.0  ;;  %v1033_v8 = vsel %vm261_vm1, %v1025_v2, 0.0  ;;  %v1045_v4 = vsel %vm261_vm1, %v1029_v30, 0.0  ;;  %v1039_v22 = vsel %vm261_vm1, %v1027_v14, 0.0 }
0x1303   :  { %1037 = vadd.xlane.f32.xlu1 %v1036_v3  ;;  %1034 = vadd.xlane.f32.xlu0 %v1033_v8  ;;  %v1051_v26 = vsel %vm261_vm1, %v1031_v24, 0.0  ;;  %v1042_v27 = vsel %vm261_vm1, %v1028_v5, 0.0  ;;  %v1048_v31 = vsel %vm261_vm1, %v1030_v20, 0.0 }
0x1307   :  { %1046 = vadd.xlane.f32.xlu1 %v1045_v4  ;;  %1040 = vadd.xlane.f32.xlu0 %v1039_v22  ;;  %v1710_v29 = vld [vmem:[#allocation2 + $0x38] sm:$0xff] }
0x1308   :  { %v1032_v33 = vmul.f32 %v1710_v29, %v1014_v11 }
0x130a   :  { %v1054_v35 = vsel %vm261_vm1, %v1032_v33, 0.0 }
0x130b   :  { %1052 = vadd.xlane.f32.xlu1 %v1051_v26  ;;  %1043 = vadd.xlane.f32.xlu0 %v1042_v27 }
0x130f   :  { %1049 = vadd.xlane.f32.xlu0 %v1048_v31 }
0x1313   :  { %1055 = vadd.xlane.f32.xlu0 %v1054_v35 }
0x138c   :  { %v1035_v37 = vpop.xlane.xlu0 %1034  ;;  %v1038_v39 = vpop.xlane.xlu1 %1037 }
0x1390   :  { %v1041_v40 = vpop.xlane.xlu0 %1040  ;;  %v1047_v41 = vpop.xlane.xlu1 %1046 }
0x1391   :  { %v1057_v45 = vmax.f32 %v1035_v37, %v1047_v41 }
0x1394   :  { %v1044_v42 = vpop.xlane.xlu0 %1043  ;;  %v1053_v43 = vpop.xlane.xlu1 %1052 }
0x1395   :  { %v1059_v46 = vmax.f32 %v1041_v40, %v1053_v43 }
0x1398   :  { %v1050_v32 = vpop.xlane.xlu0 %1049 }
0x1399   :  { %v1058_v44 = vmax.f32 %v1038_v39, %v1050_v32 }
0x139b   :  { %v1061_v48 = vmax.f32 %v1057_v45, %v1058_v44 }
0x139c   :  { %v1056_v34 = vpop.xlane.xlu0 %1055 }
0x139d   :  { %v1060_v47 = vmax.f32 %v1044_v42, %v1056_v34 }
0x139f   :  { %v1062_v49 = vmax.f32 %v1059_v46, %v1060_v47  ;;  %v1201_v47 = vld [vmem:[#allocation3] ss:$0 sm:$0xff] }
0x13a1   :  { %v1063_v50 = vmax.f32 %v1061_v48, %v1062_v49 }
0x13a3   :  { %v1064_v51 = vsub.f32 %v1035_v37, %v1063_v50  ;;  %v1065_v52 = vsub.f32 %v1038_v39, %v1063_v50  ;;  %v1066_v12 = vsub.f32 %v1041_v40, %v1063_v50  ;;  %v1067_v23 = vsub.f32 %v1044_v42, %v1063_v50 }
0x13a4   :  { %v1068_v54 = vsub.f32 %v1047_v41, %v1063_v50  ;;  %v1069_v56 = vsub.f32 %v1050_v32, %v1063_v50  ;;  %v1070_v57 = vsub.f32 %v1053_v43, %v1063_v50  ;;  %v1071_v59 = vsub.f32 %v1056_v34, %v1063_v50 }
0x13a5   :  { %v1072_v10 = vmul.f32 1.442695, %v1064_v51  ;;  %v1074_v53 = vmul.f32 1.442695, %v1065_v52  ;;  %v1076_v25 = vmul.f32 1.442695, %v1066_v12 }
0x13a6   :  { %v1078_v55 = vmul.f32 1.442695, %v1067_v23  ;;  %v1080_v58 = vmul.f32 1.442695, %v1068_v54  ;;  %v1082_v60 = vmul.f32 1.442695, %v1069_v56 }
0x13a7   :  { %1348 = vpow2.f32 %v1072_v10  ;;  %v1084_v62 = vmul.f32 1.442695, %v1070_v57  ;;  %v1086_v61 = vmul.f32 1.442695, %v1071_v59 }
0x13a8   :  { %1350 = vpow2.f32 %v1074_v53 }
0x13a9   :  { %1352 = vpow2.f32 %v1076_v25 }
0x13aa   :  { %1354 = vpow2.f32 %v1078_v55 }
0x13ab   :  { %1356 = vpow2.f32 %v1080_v58 }
0x13ac   :  { %1358 = vpow2.f32 %v1082_v60 }
0x13ad   :  { %1360 = vpow2.f32 %v1084_v62 }
0x13ae   :  { %1362 = vpow2.f32 %v1086_v61 }
0x13b4   :  { %v1349_v36 = vpop.eup %1348 }
0x13b5   :  { %v1351_v38 = vpop.eup %1350  ;;  %v1095_v63 = vmul.f32 %v1349_v36, %v1684_v15 }
0x13b6   :  { %v1353_v0 = vpop.eup %1352  ;;  %v1088_v6 = vadd.f32 %v1351_v38, %v1349_v36  ;;  %v1096_v1 = vmul.f32 %v1351_v38, %v1682_v13 }
0x13b7   :  { %v1097_v21 = vmul.f32 %v1353_v0, %v1691_v28  ;;  %v1103_v9 = vsel %vm261_vm1, %v1095_v63, 0.0  ;;  %v1355_v11 = vpop.eup %1354 }
0x13b8   :  { %v1089_v17 = vadd.f32 %v1353_v0, %v1088_v6  ;;  %v1104_v2 = vsel %vm261_vm1, %v1096_v1, 0.0  ;;  %v1357_v30 = vpop.eup %1356  ;;  %v1098_v14 = vmul.f32 %v1355_v11, %v1699_v7 }
0x13b9   :  { %v1105_v3 = vadd.f32 %v1104_v2, %v1103_v9  ;;  %v1106_v4 = vsel %vm261_vm1, %v1097_v21, 0.0  ;;  %v1359_v24 = vpop.eup %1358  ;;  %v1099_v28 = vmul.f32 %v1357_v30, %v1689_v19 }
0x13ba   :  { %v1090_v8 = vadd.f32 %v1355_v11, %v1089_v17  ;;  %v1361_v13 = vpop.eup %1360  ;;  %v1108_v26 = vsel %vm261_vm1, %v1098_v14, 0.0  ;;  %v1100_v35 = vmul.f32 %v1359_v24, %v1705_v16  ;;  %v1200_v16 = vld [vmem:[%s1744_s6] ss:$0 sm:$0xff] }
0x13bb   :  { %v1107_v22 = vadd.f32 %v1106_v4, %v1105_v3  ;;  %v1363_v31 = vpop.eup %1362  ;;  %v1110_v37 = vsel %vm261_vm1, %v1099_v28, 0.0  ;;  %v1101_v39 = vmul.f32 %v1361_v13, %v1697_v18 }
0x13bc   :  { %v1091_v15 = vadd.f32 %v1357_v30, %v1090_v8  ;;  %v1112_v40 = vsel %vm261_vm1, %v1100_v35, 0.0  ;;  %v1102_v42 = vmul.f32 %v1363_v31, %v1710_v29 }
0x13bd   :  { %v1109_v20 = vadd.f32 %v1108_v26, %v1107_v22  ;;  %v1114_v19 = vsel %vm261_vm1, %v1101_v39, 0.0 }
0x13be   :  { %v1092_v5 = vadd.f32 %v1359_v24, %v1091_v15  ;;  %v1116_v43 = vsel %vm261_vm1, %v1102_v42, 0.0 }
0x13bf   :  { %v1111_v7 = vadd.f32 %v1110_v37, %v1109_v20 }
0x13c0   :  { %v1093_v27 = vadd.f32 %v1361_v13, %v1092_v5 }
0x13c1   :  { %v1113_v41 = vadd.f32 %v1112_v40, %v1111_v7 }
0x13c2   :  { %v1094_v33 = vadd.f32 %v1363_v31, %v1093_v27 }
0x13c3   :  { %v1115_v32 = vadd.f32 %v1114_v19, %v1113_v41 }
0x13c4   :  { %1364 = vrcp.f32 %v1094_v33 }
0x13c5   :  { %v1117_v44 = vadd.f32 %v1116_v43, %v1115_v32 }
0x13d1   :  { %v1365_v34 = vpop.eup %1364 }
0x13d2   :  { %v1119_v45 = vmul.f32 %v1365_v34, %v1117_v44 }
0x13d4   :  { %v1128_v46 = vmul.f32 %v1200_v16, %v1119_v45 }
0x13d6   :  { %v1129_v18 = vsel %vm261_vm1, %v1128_v46, 0.0 }
0x13d7   :  { %1130 = vadd.xlane.f32.xlu1 %v1129_v18 }
0x1460   :  { %v1131_v48 = vpop.xlane.xlu1 %1130 }
0x1461   :  { %v1138_v29 = vadd.f32 %v1201_v47, %v1131_v48 }
0x1463   :  { %1140 = vst.msk [vmem:[%s1746_s8] sm:$0xff] %vm1139_vm2, %v1138_v29 }
0x1464   :  { %1145 = vsyncpa [#allocation5], 1 }
0x1465   :  { %1146 = vsyncpa [#allocation7], 1 }

</bundles_post_ra>
